<compile_context>
chip_gen: v7x
topology: tpu7x:2x2x1
jax: 0.10.0
libtpu: 0.0.40
codegen_flags: <defaults>
</compile_context>

<pallas_src>
import jax
import jax.numpy as jnp
from jax.experimental import pallas as pl
from jax.experimental.pallas import tpu as pltpu


def _round_up(x: int, m: int) -> int:
    return ((x + m - 1) // m) * m


def _linear_relu_kernel(x_ref, w_ref, b_ref, o_ref, acc_ref):
    # x_ref: [tm, tk]  w_ref: [tk, tn]  b_ref: [1, tn]
    # o_ref: [tm, tn]  acc_ref: [tm, tn] f32 scratch (resident across k).
    k = pl.program_id(2)

    @pl.when(k == 0)
    def _():
        acc_ref[...] = jnp.zeros_like(acc_ref)

    acc_ref[...] += jnp.dot(
        x_ref[...], w_ref[...], preferred_element_type=jnp.float32
    )

    @pl.when(k == pl.num_programs(2) - 1)
    def _():
        # Bias add + relu fused into the finalize (bias added exactly once).
        o_ref[...] = jnp.maximum(acc_ref[...] + b_ref[...], 0.0).astype(o_ref.dtype)


def base_model_forward(
    x_nchw,
    w,
    b,
    *,
    tm: int = 128,
    tn: int = 128,
    tk: int = 512,
    compute_dtype=None,
):
    """Forward pass: relu(flatten(x) @ w + b), as a tiled Pallas TPU kernel.

    x_nchw: [B, C, H, W] float32
    w:      [C*H*W, HIDDEN] float32
    b:      [HIDDEN] float32
    compute_dtype: optional dtype (e.g. jnp.bfloat16) for the MXU operands;
                   accumulation is always f32.
    returns [B, HIDDEN] float32
    """
    B = x_nchw.shape[0]
    F = x_nchw.shape[1] * x_nchw.shape[2] * x_nchw.shape[3]
    H = w.shape[1]

    # Sublane/lane alignment (bf16 packs 16 rows per sublane group).
    sub_align = 16 if compute_dtype == jnp.bfloat16 else 8
    lane_align = 128

    # Clamp tiles to the (aligned) problem size so tiny shapes don't over-pad.
    tm = min(tm, _round_up(B, sub_align))
    tn = min(tn, _round_up(H, lane_align))
    tk = min(tk, _round_up(F, lane_align))

    # Pad each dimension to an exact multiple of its tile.
    Bp = _round_up(B, tm)
    Hp = _round_up(H, tn)
    Fp = _round_up(F, tk)

    # Glue (same semantics as torch `x.view(B, -1)` + zero padding).
    x2d = x_nchw.reshape(B, F)
    x2d = jnp.pad(x2d, ((0, Bp - B), (0, Fp - F)))
    w_p = jnp.pad(w, ((0, Fp - F), (0, Hp - H)))
    b_p = jnp.pad(b, (0, Hp - H)).reshape(1, Hp).astype(jnp.float32)

    if compute_dtype is not None:
        x2d = x2d.astype(compute_dtype)
        w_p = w_p.astype(compute_dtype)

    grid = (Bp // tm, Hp // tn, Fp // tk)

    out_padded = pl.pallas_call(
        _linear_relu_kernel,
        out_shape=jax.ShapeDtypeStruct((Bp, Hp), jnp.float32),
        grid_spec=pltpu.PrefetchScalarGridSpec(
            num_scalar_prefetch=0,
            grid=grid,
            in_specs=[
                pl.BlockSpec((tm, tk), lambda i, j, k: (i, k)),  # activations
                pl.BlockSpec((tk, tn), lambda i, j, k: (k, j)),  # weights
                pl.BlockSpec((1, tn), lambda i, j, k: (0, j)),   # bias (j only)
            ],
            out_specs=pl.BlockSpec((tm, tn), lambda i, j, k: (i, j)),
            scratch_shapes=[pltpu.VMEM((tm, tn), jnp.float32)],
        ),
        compiler_params=pltpu.CompilerParams(
            # Reduction axis (F) is last and "arbitrary"; batch/hidden are
            # independent and can be sharded across TensorCores (megacore).
            dimension_semantics=("parallel", "parallel", "arbitrary"),
        ),
    )(x2d, w_p, b_p)

    return out_padded[:B, :H]


if __name__ == "__main__":
    # Small shapes consistent with the module: batch=2, channels=4, spatial=16,
    # hidden=32.
    B, C, Hh, Ww, HIDDEN = 2, 4, 16, 16, 32
    F = C * Hh * Ww

    key = jax.random.PRNGKey(0)
    kx, kw, kb = jax.random.split(key, 3)
    x = jax.random.normal(kx, (B, C, Hh, Ww), dtype=jnp.float32)
    w = jax.random.normal(kw, (F, HIDDEN), dtype=jnp.float32) * 0.02
    b = jax.random.normal(kb, (HIDDEN,), dtype=jnp.float32) * 0.01

    out = base_model_forward(x, w, b)
    jax.block_until_ready(out)

    # Reference check in plain JAX (f32 everywhere -> tight tolerance).
    ref = jnp.maximum(x.reshape(B, F) @ w + b, 0.0)
    assert out.shape == (B, HIDDEN)
    assert jnp.allclose(out, ref, atol=1e-4, rtol=1e-4)

    print("KERNEL_OK")
</pallas_src>

<mosaic_0001>
module attributes {stable_mosaic.version = 11 : i64} {
  func.func @_linear_relu_kernel(%arg0: i32, %arg1: i32, %arg2: i32, %arg3: memref<8x512xf32, #tpu.memory_space<vmem>>, %arg4: memref<512x128xf32, #tpu.memory_space<vmem>>, %arg5: memref<1x128xf32, #tpu.memory_space<vmem>>, %arg6: memref<8x128xf32, #tpu.memory_space<vmem>>, %arg7: memref<8x128xf32, #tpu.memory_space<vmem>>) attributes {dimension_semantics = [#tpu.dimension_semantics<parallel>, #tpu.dimension_semantics<parallel>, #tpu.dimension_semantics<arbitrary>], iteration_bounds = array<i64: 1, 1, 2>, scalar_prefetch = 0 : i64, scratch_operands = 1 : i64, tpu.core_type = #tpu.core_type<tc>, window_params = [{transform_indices = @transform_0, window_bounds = array<i64: 8, 512>}, {transform_indices = @transform_1, window_bounds = array<i64: 512, 128>}, {transform_indices = @transform_2, window_bounds = array<i64: 1, 128>}, {transform_indices = @transform_3, window_bounds = array<i64: 8, 128>}]} {
    %c0_i32 = arith.constant 0 : i32
    %0 = arith.cmpi eq, %arg2, %c0_i32 : i32
    %1 = arith.extui %0 : i1 to i32
    %c0_i32_0 = arith.constant 0 : i32
    %2 = arith.cmpi ne, %1, %c0_i32_0 : i32
    scf.if %2 {
      %cst_9 = arith.constant 0.000000e+00 : f32
      %12 = vector.broadcast %cst_9 : f32 to vector<8x128xf32>
      %c0_10 = arith.constant 0 : index
      %c0_11 = arith.constant 0 : index
      %13 = vector.load %arg7[%c0_10, %c0_11] : memref<8x128xf32, #tpu.memory_space<vmem>>, vector<8x128xf32>
      tpu.vector_store %arg7[%c0_10, %c0_11], %12 {strides = array<i32>} : memref<8x128xf32, #tpu.memory_space<vmem>>, vector<8x128xf32>,
    } else {
    }
    %c0 = arith.constant 0 : index
    %c0_1 = arith.constant 0 : index
    %3 = vector.load %arg7[%c0, %c0_1] : memref<8x128xf32, #tpu.memory_space<vmem>>, vector<8x128xf32>
    %c0_2 = arith.constant 0 : index
    %c0_3 = arith.constant 0 : index
    %4 = vector.load %arg3[%c0_2, %c0_3] : memref<8x512xf32, #tpu.memory_space<vmem>>, vector<8x512xf32>
    %c0_4 = arith.constant 0 : index
    %c0_5 = arith.constant 0 : index
    %5 = vector.load %arg4[%c0_4, %c0_5] : memref<512x128xf32, #tpu.memory_space<vmem>>, vector<512x128xf32>
    %cst = arith.constant dense<0.000000e+00> : vector<8x128xf32>
    %6 = tpu.matmul %4, %5, %cst {dimension_numbers = #tpu.dot_dimension_numbers<[1], [0], [0], [1], [0, 0, 1, 1], [], []>} : vector<8x512xf32>, vector<512x128xf32>, vector<8x128xf32> -> vector<8x128xf32>
    %7 = arith.addf %3, %6 : vector<8x128xf32>
    %c0_6 = arith.constant 0 : index
    %c0_7 = arith.constant 0 : index
    %8 = vector.load %arg7[%c0_6, %c0_7] : memref<8x128xf32, #tpu.memory_space<vmem>>, vector<8x128xf32>
    tpu.vector_store %arg7[%c0_6, %c0_7], %7 {strides = array<i32>} : memref<8x128xf32, #tpu.memory_space<vmem>>, vector<8x128xf32>,
    %c1_i32 = arith.constant 1 : i32
    %9 = arith.cmpi eq, %arg2, %c1_i32 : i32
    %10 = arith.extui %9 : i1 to i32
    %c0_i32_8 = arith.constant 0 : i32
    %11 = arith.cmpi ne, %10, %c0_i32_8 : i32
    scf.if %11 {
      %c0_9 = arith.constant 0 : index
      %c0_10 = arith.constant 0 : index
      %12 = vector.load %arg7[%c0_9, %c0_10] : memref<8x128xf32, #tpu.memory_space<vmem>>, vector<8x128xf32>
      %c0_11 = arith.constant 0 : index
      %c0_12 = arith.constant 0 : index
      %13 = vector.load %arg5[%c0_11, %c0_12] : memref<1x128xf32, #tpu.memory_space<vmem>>, vector<1x128xf32>
      %14 = vector.broadcast %13 : vector<1x128xf32> to vector<8x128xf32>
      %15 = arith.addf %12, %14 : vector<8x128xf32>
      %cst_13 = arith.constant 0.000000e+00 : f32
      %16 = vector.broadcast %cst_13 : f32 to vector<8x128xf32>
      %17 = arith.maximumf %15, %16 : vector<8x128xf32>
      %c0_14 = arith.constant 0 : index
      %c0_15 = arith.constant 0 : index
      %18 = vector.load %arg6[%c0_14, %c0_15] : memref<8x128xf32, #tpu.memory_space<vmem>>, vector<8x128xf32>
      tpu.vector_store %arg6[%c0_14, %c0_15], %17 {strides = array<i32>} : memref<8x128xf32, #tpu.memory_space<vmem>>, vector<8x128xf32>,
    } else {
    }
    return
  }
  func.func @transform_0(%arg0: i32, %arg1: i32, %arg2: i32) -> (i32, i32) {
    %c0_i32 = arith.constant 0 : i32
    return %arg0, %arg2 : i32, i32
  }
  func.func @transform_1(%arg0: i32, %arg1: i32, %arg2: i32) -> (i32, i32) {
    %c0_i32 = arith.constant 0 : i32
    return %arg2, %arg1 : i32, i32
  }
  func.func @transform_2(%arg0: i32, %arg1: i32, %arg2: i32) -> (i32, i32) {
    %c0_i32 = arith.constant 0 : i32
    %c0_i32_0 = arith.constant 0 : i32
    return %c0_i32, %arg1 : i32, i32
  }
  func.func @transform_3(%arg0: i32, %arg1: i32, %arg2: i32) -> (i32, i32) {
    %c0_i32 = arith.constant 0 : i32
    return %arg0, %arg1 : i32, i32
  }
}

</mosaic_0001>

<bundles_post_ra>
// kernel: tpu_custom_call.1
= control target key start
LH: loop header
LB: loop body
LE: loop exit
PB: predicated region body
PF: predicated region fallthrough
CT: control target
= control target key end

     0   :  { %8 = vsyncpa [#allocation4], 0  ;;  %s1284_s0 = inlined_call_operand.hbm [shape: f32[8,1024], index: 0, kind: input, shape index: {}]   ;;  %s1285_s1 = inlined_call_operand.hbm [shape: f32[1024,128], index: 1, kind: input, shape index: {}]   ;;  %s1286_s2 = inlined_call_operand.vmem [shape: f32[1,128], index: 2, kind: input, shape index: {}]   ;;  %s1287_s3 = inlined_call_operand.hbm [shape: f32[8,128], index: 3, kind: output, shape index: {}]  }
   0x1   :  { %10 = vsyncpa [#allocation4 + $0x1], 0 }
   0x2   :  { %11 = vsyncpa [#allocation7], 0 }
   0x3   :  { %13 = vsyncpa [#allocation7 + $0x1], 0 }
   0x4   :  { %14 = vsyncpa [#allocation5], 0  ;;  %s1008_s12 = smov 0   ;;  %s1010_s13 = smov 0  }
   0x5   :  { %s1012_s14 = smov 0   ;;  %s1014_s15 = smov 0  }
   0x6   :  { %s1016_s16 = smov 0   ;;  %s1018_s17 = smov 0  }
   0x7 LB: > { %s610_s18 = sadd.s32 4294967295, %s980_s17   ;;  %s32_s19 = sadd.s32 1, %s976_s16  ;;  %s980_s17 = sphi %s1018_s17, %s20_s17   ;;  %s976_s16 = sphi %s1016_s16, %s1301_s16   ;;  %s972_s15 = sphi %s1014_s15, %s1300_s15   ;;  %s968_s14 = sphi %s1012_s14, %s1299_s14   ;;  %s964_s13 = sphi %s1010_s13, %s1298_s13   ;;  %s960_s12 = sphi %s1008_s12, %s1297_s12  }
   0x8   : > { %p33_p0 = scmp.ge.s32.totalorder %s32_s19, 2  ;;  %s48_s20 = sadd.s32 1, %s968_s14 }
   0x9   : > { %p55_p1 = scmp.ne.s32.totalorder %s968_s14, %s964_s13  ;;  %p56_p2 = scmp.eq.s32.totalorder %s980_s17, 0 }
   0xa   : > { %s1303_s19 = smov (%p33_p0, %s32_s19), 0  ;;  %p61_p4 = scmp.ne.s32.totalorder %s964_s13, %s960_s12 }
   0xb   : > { %p1044_p3 = por %p56_p2, %p55_p1  ;;  %s44_s22 = ssub.s32 %s976_s16, %s1303_s19 }
   0xc   : > { %p62_p5 = scmp.eq.s32.totalorder %s610_s18, 0  ;;  %p46_p6 = scmp.eq.s32.totalorder %s44_s22, 0 }
   0xd   : > { %p781_p8 = scmp.lt.s32.totalorder %s980_s17, 2  ;;  %s1062_s25 = sand.u32 1, %s968_s14  }
   0xe   : > { %p1053_p7 = por %p62_p5, %p61_p4  ;;  %s630_s26 = sshll.u32 %s976_s16, 9 }
   0xf   : > { %s1059_s24 = scalar_select %p46_p6, %s968_s14, %s48_s20  }
  0x10   : > { %s1290_s23 = scalar_select %p1053_p7, 1, 0 }
  0x11   : > { %s614_s27 = sshll.u32 %s1062_s25, 5  ;;  %s1069_s30 = scalar_lea.hbm %s1284_s0, %s630_s26 }
  0x12   : > { %s177_s4 = scalar_lea.vmem [#allocation3], %s614_s27  ;;  %p1073_p9 = pnand %p781_p8, %p1044_p3 }
  0x13   : > { %s187_s5 = sshll.u32 %s177_s4, 4  ;;  %s174_s7 = scalar_lea.sflag [#allocation4], %s1062_s25  ;;  %s1077_s5 = int_to_ptr.vmem [resolvable:$true] %s187_s5 }
  0x14   : > { %s836_s8 = scalar_lea.hbm %s1069_s30, 512  ;;  %p838_p13 = pneg %p1073_p9 }
  0x15   : > { %p837_p12 = scmp.ne.s32.totalorder %s1069_s30, %s836_s8  ;;  %s841_s11 = scalar_lea.hbm %s1284_s0, 1024 }
  0x16   : > { %p842_p2 = scmp.lt.u32.totalorder %s1069_s30, %s1284_s0  ;;  %p843_p3 = scmp.lt.u32.totalorder %s841_s11, %s836_s8 }
  0x17   : > { %p839_p0 = pnand %p838_p13, %p837_p12  ;;  %p845_p5 = scmp.lt.u32.totalorder %s836_s8, %s1069_s30 }
  0x18   : > { %p844_p4 = por %p843_p3, %p842_p2 }
  0x19   : > { %p840_p1 = pneg %p839_p0 }
  0x1a   : > { %p846_p6 = por %p845_p5, %p844_p4 }
  0x1c   : > { %p847_p8 = pnand %p846_p6, %p840_p1 }
  0x1e   : > { %850 = shalt.err (!%p847_p8)
}
  0x1f   : > { %s851_s21 = scalar_lea.vmem %s1077_s5, 512  ;;  %s982_s22 = smov [#allocation3]  }
  0x20   : > { %p852_p12 = scmp.ne.s32.totalorder %s1077_s5, %s851_s21  ;;  %s856_s26 = sshll.u32 %s982_s22, 4  ;;  %s857_s26 = int_to_ptr.vmem [resolvable:$false] %s856_s26 }
  0x21   : > { %s858_s27 = scalar_lea.vmem %s857_s26, 1024  ;;  %p859_p11 = scmp.lt.s32.totalorder %s1077_s5, %s857_s26 }
  0x22   : > { %p854_p0 = pnand %p852_p12, %p838_p13  ;;  %p860_p2 = scmp.lt.s32.totalorder %s858_s27, %s851_s21 }
  0x24   : > { %p855_p10 = pneg %p854_p0  ;;  %p861_p3 = por %p860_p2, %p859_p11 }
  0x26   : > { %p862_p4 = pnand %p861_p3, %p855_p10 }
  0x28   : > { %865 = shalt.err (!%p862_p4)
}
  0x29   : > { %777 = dma.hbm_to_vmem [thread:$0]  (!%p1073_p9), %s1069_s30, 512, %s1077_s5, %s174_s7  }
  0x2a   : > { %p1292_p1 = scmp.lt.s32.totalorder %s980_s17, 3  ;;  %p1293_p5 = scmp.ge.s32.totalorder %s980_s17, 1 }
  0x2b   : > { %s617_s29 = sshll.u32 %s1062_s25, 9  ;;  %s631_s4 = sshll.u32 %s976_s16, 13 }
  0x2c   : > { %p1111_p6 = pnand %p1293_p5, %p1292_p1  ;;  %s1120_s10 = scalar_lea.hbm %s1285_s1, %s631_s4 }
  0x2d   : > { %s198_s11 = scalar_lea.vmem [#allocation6], %s617_s29  ;;  %s195_s30 = scalar_lea.sflag [#allocation7], %s1062_s25 }
  0x2e   : > { %s206_s12 = sshll.u32 %s198_s11, 4  ;;  %s866_s5 = scalar_lea.hbm %s1120_s10, 8192  ;;  %s1122_s12 = int_to_ptr.vmem [resolvable:$true] %s206_s12 }
  0x2f   : > { %p867_p10 = scmp.ne.s32.totalorder %s1120_s10, %s866_s5  ;;  %s871_s21 = scalar_lea.hbm %s1285_s1, 16384 }
  0x30   : > { %p872_p12 = scmp.lt.u32.totalorder %s1120_s10, %s1285_s1  ;;  %p873_p0 = scmp.lt.u32.totalorder %s871_s21, %s866_s5 }
  0x31   : > { %p869_p11 = pnand %p867_p10, %p838_p13  ;;  %p875_p3 = scmp.lt.u32.totalorder %s866_s5, %s1120_s10 }
  0x32   : > { %p874_p2 = por %p873_p0, %p872_p12 }
  0x33   : > { %p870_p8 = pneg %p869_p11 }
  0x34   : > { %p876_p4 = por %p875_p3, %p874_p2 }
  0x36   : > { %p877_p1 = pnand %p876_p4, %p870_p8 }
  0x38   : > { %880 = shalt.err (!%p877_p1)
}
  0x39   : > { %s881_s27 = scalar_lea.vmem %s1122_s12, 8192  ;;  %s983_s29 = smov [#allocation6]  }
  0x3a   : > { %p882_p5 = scmp.ne.s32.totalorder %s1122_s12, %s881_s27  ;;  %s886_s4 = sshll.u32 %s983_s29, 4  ;;  %s887_s4 = int_to_ptr.vmem [resolvable:$false] %s886_s4 }
  0x3b   : > { %s888_s8 = scalar_lea.vmem %s887_s4, 16384  ;;  %p889_p7 = scmp.lt.s32.totalorder %s1122_s12, %s887_s4 }
  0x3c   : > { %p884_p10 = pnand %p882_p5, %p838_p13  ;;  %p890_p12 = scmp.lt.s32.totalorder %s888_s8, %s881_s27 }
  0x3e   : > { %p885_p11 = pneg %p884_p10  ;;  %p891_p0 = por %p890_p12, %p889_p7 }
  0x40   : > { %p892_p2 = pnand %p891_p0, %p885_p11 }
  0x42   : > { %895 = shalt.err (!%p892_p2)
}
  0x43   : > { %s984_s9 = smov 128   ;;  %s985_s11 = smov 8  }
  0x44   : > { %780 = dma.hbm_to_vmem [thread:$0]  (!%p1073_p9), %s1120_s10, 8192, %s1122_s12, %s195_s30, %s984_s9, %s984_s9, %s985_s11  }
  0x45   : > { %218 = sbr.rel (%p1111_p6) target bundleno = 383 (0x17f), region = 32  ;;  %s220_s5 = sand.u32 (!%p1111_p6), 1, %s964_s13  }
  0x46   : > { %s621_s7 = sshll.u32 (!%p1111_p6), %s220_s5, 5  ;;  %s221_s20 = scalar_lea.sflag (!%p1111_p6), [#allocation4], %s220_s5 }
  0x47   : > { %s1153_s21 = scalar_lea.vmem (!%p1111_p6), [#allocation3], %s621_s7  ;;  %p1295_p7 = scmp.ne.s32.totalorder (!%p1111_p6), %s1290_s23, 0 }
  0x4c   : > { %947 = dma.done.wait (%p1295_p7), %s221_s20, 512  }
  0x4d   : > { %949 = vsyncadd (%p1295_p7), %s221_s20, 4294966784  ;;  %s622_s22 = sshll.u32 %s220_s5, 9  ;;  %s230_s6 = scalar_lea.sflag [#allocation7], %s220_s5 }
  0x4e   : > { %s1159_s25 = scalar_lea.vmem [#allocation6], %s622_s22 }
  0x4f   : > { %951 = dma.done.wait (%p1295_p7), %s230_s6, 8192  }
  0x50   : > { %953 = vsyncadd (%p1295_p7), %s230_s6, 4294959104  ;;  %p623_p9 = scmp.ne.s32.totalorder %s972_s15, 0 }
  0x51   : > { %v986_v0 = vmov (!%p623_p9), 0.0  }
  0x52   : > { %267 = sbr.rel (%p623_p9) target bundleno = 89 (0x59), region = 44  ;;  %268 = vst [vmem:[#allocation2] sm:$0xff] (!%p623_p9), %v986_v0 }
  0x59 PF: > { %v290_v1 = vld [vmem:[%s1159_s25 + $0x80] sm:$0xff]  ;;  %v291_v2 = vld [vmem:[%s1159_s25 + $0x88] sm:$0xff]  ;;  %v292_v12 = vld [vmem:[%s1159_s25 + $0x90] sm:$0xff]  ;;  %p624_p13 = scmp.ne.s32.totalorder %s972_s15, 1 }
  0x5a   : > { %v322_v3 = vld [vmem:[%s1159_s25 + $0x180] sm:$0xff]  ;;  %v702_v4 = vpack.c.bf16 %v291_v2, %v290_v1  ;;  %v323_v5 = vld [vmem:[%s1159_s25 + $0x188] sm:$0xff]  ;;  %v293_v14 = vld [vmem:[%s1159_s25 + $0x98] sm:$0xff] }
  0x5b   : > { %v274_v6 = vld [vmem:[%s1159_s25] sm:$0xff]  ;;  %v275_v7 = vld [vmem:[%s1159_s25 + $0x8] sm:$0xff]  ;;  %v734_v8 = vpack.c.bf16 %v323_v5, %v322_v3  ;;  %v324_v15 = vld [vmem:[%s1159_s25 + $0x190] sm:$0xff]  ;;  %v706_v17 = vpack.c.bf16 %v293_v14, %v292_v12 }
  0x5c   : > { %v704_v9 = vpack.c.bf16 %v275_v7, %v274_v6  ;;  %v306_v10 = vld [vmem:[%s1159_s25 + $0x100] sm:$0xff]  ;;  %v307_v11 = vld [vmem:[%s1159_s25 + $0x108] sm:$0xff]  ;;  %703 = vmatprep.subr.bf16.mxu0 %v702_v4  ;;  %v325_v16 = vld [vmem:[%s1159_s25 + $0x198] sm:$0xff] }
  0x5d   : > { %v736_v13 = vpack.c.bf16 %v307_v11, %v306_v10  ;;  %735 = vmatprep.subr.bf16.mxu1 %v734_v8  ;;  %v738_v18 = vpack.c.bf16 %v325_v16, %v324_v15  ;;  %v276_v19 = vld [vmem:[%s1159_s25 + $0x10] sm:$0xff]  ;;  %v277_v20 = vld [vmem:[%s1159_s25 + $0x18] sm:$0xff]  ;;  %v294_v24 = vld [vmem:[%s1159_s25 + $0xa0] sm:$0xff] }
  0x5e   : > { %705 = vmatpush3.bf16.msra.mxu0 %v704_v9  ;;  %v308_v21 = vld [vmem:[%s1159_s25 + $0x110] sm:$0xff]  ;;  %v708_v22 = vpack.c.bf16 %v277_v20, %v276_v19  ;;  %v309_v23 = vld [vmem:[%s1159_s25 + $0x118] sm:$0xff]  ;;  %v295_v25 = vld [vmem:[%s1159_s25 + $0xa8] sm:$0xff] }
  0x5f   : > { %737 = vmatpush3.bf16.msra.mxu1 %v736_v13  ;;  %707 = vmatprep.subr.bf16.mxu0 %v706_v17  ;;  %v740_v26 = vpack.c.bf16 %v309_v23, %v308_v21  ;;  %v710_v27 = vpack.c.bf16 %v295_v25, %v294_v24  ;;  %v326_v28 = vld [vmem:[%s1159_s25 + $0x1a0] sm:$0xff]  ;;  %v327_v29 = vld [vmem:[%s1159_s25 + $0x1a8] sm:$0xff]  ;;  %v296_v36 = vld [vmem:[%s1159_s25 + $0xb0] sm:$0xff] }
  0x60   : > { %739 = vmatprep.subr.bf16.mxu1 %v738_v18  ;;  %v278_v30 = vld [vmem:[%s1159_s25 + $0x20] sm:$0xff]  ;;  %v742_v31 = vpack.c.bf16 %v327_v29, %v326_v28  ;;  %v279_v32 = vld [vmem:[%s1159_s25 + $0x28] sm:$0xff]  ;;  %v297_v37 = vld [vmem:[%s1159_s25 + $0xb8] sm:$0xff] }
  0x61   : > { %v310_v33 = vld [vmem:[%s1159_s25 + $0x120] sm:$0xff]  ;;  %v311_v34 = vld [vmem:[%s1159_s25 + $0x128] sm:$0xff]  ;;  %v712_v35 = vpack.c.bf16 %v279_v32, %v278_v30  ;;  %v328_v38 = vld [vmem:[%s1159_s25 + $0x1b0] sm:$0xff]  ;;  %v714_v40 = vpack.c.bf16 %v297_v37, %v296_v36 }
  0x62   : > { %709 = vmatpush3.bf16.msra.mxu0 %v708_v22  ;;  %v744_v39 = vpack.c.bf16 %v311_v34, %v310_v33  ;;  %v329_v41 = vld [vmem:[%s1159_s25 + $0x1b8] sm:$0xff]  ;;  %v280_v42 = vld [vmem:[%s1159_s25 + $0x30] sm:$0xff]  ;;  %v298_v47 = vld [vmem:[%s1159_s25 + $0xc0] sm:$0xff] }
  0x63   : > { %741 = vmatpush3.bf16.msra.mxu1 %v740_v26  ;;  %711 = vmatprep.subr.bf16.mxu0 %v710_v27  ;;  %v281_v43 = vld [vmem:[%s1159_s25 + $0x38] sm:$0xff]  ;;  %v746_v44 = vpack.c.bf16 %v329_v41, %v328_v38  ;;  %v312_v45 = vld [vmem:[%s1159_s25 + $0x130] sm:$0xff]  ;;  %v299_v48 = vld [vmem:[%s1159_s25 + $0xc8] sm:$0xff] }
  0x64   : > { %743 = vmatprep.subr.bf16.mxu1 %v742_v31  ;;  %v313_v46 = vld [vmem:[%s1159_s25 + $0x138] sm:$0xff]  ;;  %v330_v49 = vld [vmem:[%s1159_s25 + $0x1c0] sm:$0xff]  ;;  %v331_v50 = vld [vmem:[%s1159_s25 + $0x1c8] sm:$0xff]  ;;  %v716_v51 = vpack.c.bf16 %v281_v43, %v280_v42  ;;  %v718_v53 = vpack.c.bf16 %v299_v48, %v298_v47 }
  0x65   : > { %v748_v52 = vpack.c.bf16 %v313_v46, %v312_v45  ;;  %v282_v54 = vld [vmem:[%s1159_s25 + $0x40] sm:$0xff]  ;;  %v283_v55 = vld [vmem:[%s1159_s25 + $0x48] sm:$0xff]  ;;  %v750_v57 = vpack.c.bf16 %v331_v50, %v330_v49  ;;  %v300_v59 = vld [vmem:[%s1159_s25 + $0xd0] sm:$0xff] }
  0x66   : > { %713 = vmatpush3.bf16.msra.mxu0 %v712_v35  ;;  %v314_v56 = vld [vmem:[%s1159_s25 + $0x140] sm:$0xff]  ;;  %v315_v58 = vld [vmem:[%s1159_s25 + $0x148] sm:$0xff]  ;;  %v301_v60 = vld [vmem:[%s1159_s25 + $0xd8] sm:$0xff]  ;;  %v720_v63 = vpack.c.bf16 %v283_v55, %v282_v54 }
  0x67   : > { %745 = vmatpush3.bf16.msra.mxu1 %v744_v39  ;;  %715 = vmatprep.subr.bf16.mxu0 %v714_v40  ;;  %v332_v61 = vld [vmem:[%s1159_s25 + $0x1d0] sm:$0xff]  ;;  %v333_v62 = vld [vmem:[%s1159_s25 + $0x1d8] sm:$0xff]  ;;  %v752_v0 = vpack.c.bf16 %v315_v58, %v314_v56  ;;  %v722_v1 = vpack.c.bf16 %v301_v60, %v300_v59  ;;  %v302_v7 = vld [vmem:[%s1159_s25 + $0xe0] sm:$0xff] }
  0x68   : > { %747 = vmatprep.subr.bf16.mxu1 %v746_v44  ;;  %v284_v2 = vld [vmem:[%s1159_s25 + $0x50] sm:$0xff]  ;;  %v285_v3 = vld [vmem:[%s1159_s25 + $0x58] sm:$0xff]  ;;  %v754_v5 = vpack.c.bf16 %v333_v62, %v332_v61  ;;  %v303_v8 = vld [vmem:[%s1159_s25 + $0xe8] sm:$0xff] }
  0x69   : > { %v316_v4 = vld [vmem:[%s1159_s25 + $0x150] sm:$0xff]  ;;  %v317_v6 = vld [vmem:[%s1159_s25 + $0x158] sm:$0xff]  ;;  %v334_v9 = vld [vmem:[%s1159_s25 + $0x1e0] sm:$0xff]  ;;  %v724_v11 = vpack.c.bf16 %v285_v3, %v284_v2  ;;  %v726_v15 = vpack.c.bf16 %v303_v8, %v302_v7 }
  0x6a   : > { %717 = vmatpush3.bf16.msra.mxu0 %v716_v51  ;;  %v335_v10 = vld [vmem:[%s1159_s25 + $0x1e8] sm:$0xff]  ;;  %v286_v12 = vld [vmem:[%s1159_s25 + $0x60] sm:$0xff]  ;;  %v756_v14 = vpack.c.bf16 %v317_v6, %v316_v4  ;;  %v273_v18 = vld [vmem:[%s1153_s21 + $0x18] sm:$0xff] }
  0x6b   : > { %749 = vmatpush3.bf16.msra.mxu1 %v748_v52  ;;  %719 = vmatprep.subr.bf16.mxu0 %v718_v53  ;;  %v287_v13 = vld [vmem:[%s1159_s25 + $0x68] sm:$0xff]  ;;  %v318_v16 = vld [vmem:[%s1159_s25 + $0x160] sm:$0xff]  ;;  %v758_v19 = vpack.c.bf16 %v335_v10, %v334_v9  ;;  %v304_v21 = vld [vmem:[%s1159_s25 + $0xf0] sm:$0xff] }
  0x6c   : > { %751 = vmatprep.subr.bf16.mxu1 %v750_v57  ;;  %v271_v17 = vld [vmem:[%s1153_s21 + $0x8] sm:$0xff]  ;;  %v305_v22 = vld [vmem:[%s1159_s25 + $0xf8] sm:$0xff]  ;;  %v336_v23 = vld [vmem:[%s1159_s25 + $0x1f0] sm:$0xff]  ;;  %472 = vmatprep.mubr.f32.mxu1 %v273_v18  ;;  %v728_v25 = vpack.c.bf16 %v287_v13, %v286_v12 }
  0x6d   : > { %v319_v20 = vld [vmem:[%s1159_s25 + $0x168] sm:$0xff]  ;;  %402 = vmatprep.mubr.f32.mxu0 %v271_v17  ;;  %v337_v24 = vld [vmem:[%s1159_s25 + $0x1f8] sm:$0xff]  ;;  %v730_v27 = vpack.c.bf16 %v305_v22, %v304_v21  ;;  %v288_v28 = vld [vmem:[%s1159_s25 + $0x70] sm:$0xff] }
  0x6e   : > { %721 = vmatpush3.bf16.msra.mxu0 %v720_v63  ;;  %v760_v26 = vpack.c.bf16 %v319_v20, %v318_v16  ;;  %v289_v29 = vld [vmem:[%s1159_s25 + $0x78] sm:$0xff]  ;;  %v762_v30 = vpack.c.bf16 %v337_v24, %v336_v23  ;;  %v320_v31 = vld [vmem:[%s1159_s25 + $0x170] sm:$0xff]  ;;  %v270_v35 = vld [vmem:[%s1153_s21] sm:$0xff] }
  0x6f   : > { %753 = vmatpush3.bf16.msra.mxu1 %v752_v0  ;;  %723 = vmatprep.subr.bf16.mxu0 %v722_v1  ;;  %v321_v32 = vld [vmem:[%s1159_s25 + $0x178] sm:$0xff]  ;;  %v732_v33 = vpack.c.bf16 %v289_v29, %v288_v28  ;;  %v272_v36 = vld [vmem:[%s1153_s21 + $0x10] sm:$0xff] }
  0x70   : > { %755 = vmatprep.subr.bf16.mxu1 %v754_v5  ;;  %v764_v34 = vpack.c.bf16 %v321_v32, %v320_v31  ;;  %v269_v43 = vld [vmem:[#allocation2] sm:$0xff] }
  0x71   : > { %v625_v47 = vld [vmem:[%s1286_s2] ss:$0 sm:$0xff] (!%p624_p13) }
  0x72   : > { %725 = vmatpush3.bf16.msra.mxu0 %v724_v11 }
  0x73   : > { %757 = vmatpush3.bf16.msra.mxu1 %v756_v14  ;;  %727 = vmatprep.subr.bf16.mxu0 %v726_v15 }
  0x74   : > { %759 = vmatprep.subr.bf16.mxu1 %v758_v19 }
  0x76   : > { %729 = vmatpush3.bf16.msra.mxu0 %v728_v25 }
  0x77   : > { %761 = vmatpush3.bf16.msra.mxu1 %v760_v26  ;;  %731 = vmatprep.subr.bf16.mxu0 %v730_v27 }
  0x78   : > { %763 = vmatprep.subr.bf16.mxu1 %v762_v30 }
  0x7a   : > { %733 = vmatpush3.bf16.msra.mxu0 %v732_v33 }
  0x7b   : > { %765 = vmatpush3.bf16.msra.mxu1 %v764_v34 }
  0x7d   : > { %403 = vmatmul.mubr.f32.vlgmr.msra.gmra.mrb[0].mxu0 %v270_v35 }
  0x7e   : > { %473 = vmatmul.mubr.f32.vlgmr.msra.gmra.mrb[0].mxu1 %v272_v36 }
 0x150   : > { %v664_v37 = vpop.f32.mrb[0].mxu0 }
 0x151   : > { %v699_v38 = vpop.f32.mrb[0].mxu1  ;;  %v665_v39 = vpop.f32.mrb[1].mxu0 }
 0x152   : > { %v666_v40 = vadd.f32 %v665_v39, %v664_v37  ;;  %v700_v41 = vpop.f32.mrb[1].mxu1 }
 0x153   : > { %v701_v42 = vadd.f32 %v700_v41, %v699_v38  ;;  %483 = sbr.rel (%p624_p13) target bundleno = 358 (0x166), region = 48 }
 0x155   : > { %v475_v44 = vadd.f32 %v701_v42, %v666_v40 }
 0x157   : > { %v478_v45 = vadd.f32 %v475_v44, %v269_v43 }
 0x159   : > { %479 = vst [vmem:[#allocation2] sm:$0xff] %v478_v45 }
 0x160   : > { %v484_v46 = vld [vmem:[#allocation2] sm:$0xff] }
 0x161   : > { %v492_v48 = vadd.f32 %v625_v47, %v484_v46 }
 0x163   : > { %v493_v49 = vmax.f32 %v492_v48, 0.0 }
 0x165   : > { %494 = vst [vmem:[#allocation8] sm:$0xff] %v493_v49 }
 0x166 PF: > { %p1240_p6 = scmp.eq.s32.totalorder %s610_s18, 1  ;;  %s987_s12 = smov [#allocation8]  }
 0x167   : > { %s505_s30 = sshll.u32 %s987_s12, 4  ;;  %s506_s30 = int_to_ptr.vmem [resolvable:$true] %s505_s30 }
 0x168   : > { %s896_s15 = scalar_lea.vmem %s506_s30, 128  ;;  %p903_p1 = scmp.lt.s32.totalorder %s506_s30, %s506_s30 }
 0x169   : > { %p897_p8 = scmp.ne.s32.totalorder %s506_s30, %s896_s15  ;;  %p904_p5 = scmp.lt.s32.totalorder %s896_s15, %s896_s15 }
 0x16b   : > { %p898_p3 = pnand %p897_p8, %p1240_p6  ;;  %p905_p10 = por %p904_p5, %p903_p1 }
 0x16d   : > { %p899_p4 = pneg %p898_p3 }
 0x16f   : > { %p906_p11 = pnand %p905_p10, %p899_p4 }
 0x171   : > { %909 = shalt.err (!%p906_p11)
}
 0x172   : > { %s910_s18 = scalar_lea.hbm %s1287_s3, 128 }
 0x173   : > { %p911_p12 = scmp.ne.s32.totalorder %s1287_s3, %s910_s18  ;;  %p916_p7 = scmp.lt.u32.totalorder %s910_s18, %s1287_s3 }
 0x175   : > { %p912_p0 = pnand %p911_p12, %p1240_p6 }
 0x177   : > { %p913_p2 = pneg %p912_p0 }
 0x179   : > { %p918_p9 = pnand %p916_p7, %p913_p2 }
 0x17b   : > { %921 = shalt.err (!%p918_p9)
}
 0x17c   : > { %771 = dma.vmem_to_hbm [thread:$0]  (%p1240_p6), %s506_s30, 128, %s1287_s3, [#allocation5]  }
 0x17d   : > { %955 = dma.done.wait (%p1240_p6), [#allocation5], 128  }
 0x17e   : > { %957 = vsyncadd (%p1240_p6), [#allocation5], 4294967168 }
 0x17f PF: > { %s20_s17 = sadd.s32 1, %s980_s17   ;;  %s1297_s12 = smov %s964_s13 }
 0x180   : > { %p17_p13 = scmp.ge.s32.totalorder %s20_s17, 4   ;;  %s1298_s13 = smov %s968_s14 }
 0x181   : > { %s1299_s14 = smov %s1059_s24  ;;  %s1300_s15 = smov %s976_s16 }
 0x182   : > { %s1301_s16 = smov %s1303_s19  ;;  %19 = sbr.rel (!%p17_p13) target bundleno = 7 (0x7), region = 94 }
 0x189   :  { %518 = vsyncpa [#allocation4], 1 }
 0x18a   :  { %520 = vsyncpa [#allocation4 + $0x1], 1 }
 0x18b   :  { %521 = vsyncpa [#allocation7], 1 }
 0x18c   :  { %523 = vsyncpa [#allocation7 + $0x1], 1 }
 0x18d   :  { %524 = vsyncpa [#allocation5], 1 }
 0x18e   :  { %526 = vsyncpa [#allocation5 + $0x1], 1 }

</bundles_post_ra>
